<compile_context>
chip_gen: v7x
topology: tpu7x:2x2x1
jax: 0.10.0
libtpu: 0.0.40
codegen_flags: <defaults>
</compile_context>

<pallas_src>
import functools

import jax
import jax.numpy as jnp
from jax.experimental import pallas as pl
from jax.experimental.pallas import tpu as pltpu


_TARGET_TILE_BYTES = 2 * 1024 * 1024      # ~2 MiB per VMEM buffer
_MAX_LANE_TILE = 2048                     # lane-tile cap (multiple of 128)
_VMEM_LIMIT_BYTES = 32 * 1024 * 1024      # safe on v5e/v6e/v7x


def _copy_kernel(x_ref, o_ref):
    # Pure tile copy: the chomp lives entirely in the grid / BlockSpecs, so
    # this is a double-buffered HBM->HBM copy running at memory roofline.
    o_ref[...] = x_ref[...]


def _slice_kernel(x_ref, o_ref, *, l_out):
    # Short-sequence path: full-length input block, static slice along lanes.
    o_ref[...] = x_ref[:, :l_out]


def _round_up(x, m):
    return (x + m - 1) // m * m


def _sublane_multiple(dtype):
    # f32/i32 -> 8, bf16/f16 -> 16, int8/fp8 -> 32 (sub-32-bit packs sublanes).
    return 32 // jnp.dtype(dtype).itemsize


def _row_tile(rows, bytes_per_row, sub, target_bytes):
    """Row tile from a byte budget, rounded to the dtype-aware sublane multiple."""
    tr = max(1, target_bytes // max(bytes_per_row, 1))
    tr = _round_up(min(tr, rows), sub)
    if tr >= rows:
        tr = rows            # full row extent: always layout-legal
    return tr


def _split_rows_for_megacore(tr, rows, sub):
    """Ensure >= 2 row blocks (v7x has 2 TensorCores) when rows allow it."""
    if tr >= rows and rows > sub:
        half = min(rows, _round_up(pl.cdiv(rows, 2), sub))
        if half < rows:
            tr = half
    return tr


def chomp1d(
    x: jax.Array,
    chomp_size: int,
    *,
    target_tile_bytes: int = _TARGET_TILE_BYTES,
    max_lane_tile: int = _MAX_LANE_TILE,
    vmem_limit_bytes: int = _VMEM_LIMIT_BYTES,
) -> jax.Array:
    """Pallas equivalent of Chomp1d.forward: x[:, :, :-chomp_size].contiguous()."""
    # TODO(synk): PyTorch's x[:, :, :-0] returns an empty tensor; chomp_size == 0
    # is not supported here (never used in real TCNs, where chomp = padding > 0).
    assert chomp_size > 0, "chomp_size must be positive"
    assert max_lane_tile % 128 == 0
    n, c, l = x.shape
    l_out = l - chomp_size
    assert l_out > 0, "chomp_size must be smaller than the length dimension"

    rows = n * c
    x2 = x.reshape(rows, l)              # free reshape: NCL is contiguous.

    dtype_bytes = jnp.dtype(x.dtype).itemsize
    sub = _sublane_multiple(x.dtype)
    cost = pl.CostEstimate(
        flops=0,
        transcendentals=0,
        bytes_accessed=2 * rows * l_out * dtype_bytes,
    )

    def cparams(sems):
        return pltpu.CompilerParams(
            dimension_semantics=sems, vmem_limit_bytes=vmem_limit_bytes)

    if l <= max_lane_tile:
        # Short-sequence path: one full-length block per row tile; chomp is a
        # static lane slice in-kernel.  Block last dims equal the full array
        # dims, so the (8, 128) layout rule is trivially satisfied, and both
        # input and output DMAs are fully contiguous.
        tr = _row_tile(rows, l * dtype_bytes, sub, target_tile_bytes)
        tr = _split_rows_for_megacore(tr, rows, sub)
        grid_r = pl.cdiv(rows, tr)
        out2 = pl.pallas_call(
            functools.partial(_slice_kernel, l_out=l_out),
            out_shape=jax.ShapeDtypeStruct((rows, l_out), x.dtype),
            grid_spec=pl.GridSpec(
                grid=(grid_r,),
                in_specs=[pl.BlockSpec((tr, l), lambda i: (i, 0))],
                out_specs=pl.BlockSpec((tr, l_out), lambda i: (i, 0)),
            ),
            compiler_params=cparams(("parallel",)),
            cost_estimate=cost,
        )(x2)
    else:
        # Long-sequence path: lane-dense tiles; the chomp is done by the grid
        # extent over l_out (the chomped tail is never DMA'd except a few
        # masked boundary lanes in the final partial block).
        tl = min(max_lane_tile, _round_up(l_out, 128))
        grid_l = pl.cdiv(l_out, tl)
        tr = _row_tile(rows, tl * dtype_bytes, sub, target_tile_bytes)
        if grid_l == 1:
            tr = _split_rows_for_megacore(tr, rows, sub)
        grid_r = pl.cdiv(rows, tr)
        out2 = pl.pallas_call(
            _copy_kernel,
            out_shape=jax.ShapeDtypeStruct((rows, l_out), x.dtype),
            grid_spec=pl.GridSpec(
                grid=(grid_r, grid_l),
                in_specs=[pl.BlockSpec((tr, tl), lambda i, j: (i, j))],
                out_specs=pl.BlockSpec((tr, tl), lambda i, j: (i, j)),
            ),
            compiler_params=cparams(("parallel", "parallel")),
            cost_estimate=cost,
        )(x2)

    return out2.reshape(n, c, l_out)


if __name__ == "__main__":
    key = jax.random.PRNGKey(0)

    # 1) Small shape consistent with the module (short-sequence path).
    batch, channels, length = 2, 4, 16
    chomp_size = 3
    x = jax.random.normal(key, (batch, channels, length), dtype=jnp.float32)
    out = chomp1d(x, chomp_size)
    jax.block_until_ready(out)
    assert out.shape == (batch, channels, length - chomp_size), out.shape
    assert out.dtype == x.dtype
    assert jnp.array_equal(out, x[:, :, :-chomp_size]), "Chomp1d mismatch (short path)"

    # 2) Lane-dense tiled (long) path: partial last lane block, chomp done at
    #    the BlockSpec/DMA level.  Small max_lane_tile forces this path.
    k2 = jax.random.fold_in(key, 1)
    x2 = jax.random.normal(k2, (2, 8, 640), dtype=jnp.float32)
    out2 = chomp1d(x2, 13, max_lane_tile=256)
    jax.block_until_ready(out2)
    assert jnp.array_equal(out2, x2[:, :, :-13]), "Chomp1d mismatch (tiled path)"

    # 3) Row + lane tiling simultaneously (partial blocks on both axes).
    k3 = jax.random.fold_in(key, 2)
    x3 = jax.random.normal(k3, (4, 8, 640), dtype=jnp.float32)
    out3 = chomp1d(x3, 5, max_lane_tile=256, target_tile_bytes=8 * 256 * 4)
    jax.block_until_ready(out3)
    assert jnp.array_equal(out3, x3[:, :, :-5]), "Chomp1d mismatch (row+lane tiles)"

    # 4) bf16: dtype-aware sublane multiple (16) + megacore >=2-block row split.
    k4 = jax.random.fold_in(key, 3)
    x4 = jax.random.normal(k4, (2, 24, 300), dtype=jnp.bfloat16)
    out4 = chomp1d(x4, 7)
    jax.block_until_ready(out4)
    assert out4.dtype == jnp.bfloat16
    assert jnp.array_equal(out4, x4[:, :, :-7]), "Chomp1d mismatch (bf16 path)"

    print("KERNEL_OK")
</pallas_src>

<mosaic_0001>
module attributes {stable_mosaic.version = 11 : i64} {
  func.func @_slice_kernel(%arg0: i32, %arg1: memref<8x16xf32, #tpu.memory_space<vmem>>, %arg2: memref<8x13xf32, #tpu.memory_space<vmem>>) attributes {dimension_semantics = [#tpu.dimension_semantics<parallel>], iteration_bounds = array<i64: 1>, scalar_prefetch = 0 : i64, scratch_operands = 0 : i64, tpu.core_type = #tpu.core_type<tc>, window_params = [{transform_indices = @transform_0, window_bounds = array<i64: 8, 16>}, {transform_indices = @transform_1, window_bounds = array<i64: 8, 13>}]} {
    %c0 = arith.constant 0 : index
    %c0_0 = arith.constant 0 : index
    %0 = vector.load %arg1[%c0, %c0_0] : memref<8x16xf32, #tpu.memory_space<vmem>>, vector<8x13xf32>
    %c0_1 = arith.constant 0 : index
    %c0_2 = arith.constant 0 : index
    %1 = vector.load %arg2[%c0_1, %c0_2] : memref<8x13xf32, #tpu.memory_space<vmem>>, vector<8x13xf32>
    tpu.vector_store %arg2[%c0_1, %c0_2], %0 {strides = array<i32>} : memref<8x13xf32, #tpu.memory_space<vmem>>, vector<8x13xf32>,
    return
  }
  func.func @transform_0(%arg0: i32) -> (i32, i32) {
    %c0_i32 = arith.constant 0 : i32
    %c0_i32_0 = arith.constant 0 : i32
    return %arg0, %c0_i32 : i32, i32
  }
  func.func @transform_1(%arg0: i32) -> (i32, i32) {
    %c0_i32 = arith.constant 0 : i32
    %c0_i32_0 = arith.constant 0 : i32
    return %arg0, %c0_i32 : i32, i32
  }
}

</mosaic_0001>

<bundles_post_ra>
// kernel: tpu_custom_call.1
= control target key start
LH: loop header
LB: loop body
LE: loop exit
PB: predicated region body
PF: predicated region fallthrough
CT: control target
= control target key end

     0   :  { %6 = vsyncpa [#allocation3], 0  ;;  %s125_s0 = inlined_call_operand.hbm [shape: f32[8,16], index: 0, kind: input, shape index: {}]   ;;  %s126_s1 = inlined_call_operand.hbm [shape: f32[8,13], index: 1, kind: output, shape index: {}]  }
   0x1   :  { %7 = vsyncpa [#allocation4], 0  ;;  %s89_s6 = smov [#allocation2]   ;;  %s41_s10 = scalar_lea.hbm %s125_s0, 128 }
   0x2   :  { %s14_s7 = sshll.u32 %s89_s6, 4  ;;  %p42_p0 = scmp.ne.s32.totalorder %s125_s0, %s41_s10  ;;  %s15_s7 = int_to_ptr.vmem [resolvable:$true] %s14_s7 }
   0x3   :  { %p45_p1 = scmp.lt.u32.totalorder %s41_s10, %s125_s0 }
   0x5   :  { %p47_p2 = pnand %p45_p1, %p42_p0 }
   0x7   :  { %50 = shalt.err (!%p47_p2)
}
   0x8   :  { %s51_s15 = scalar_lea.vmem %s15_s7, 128  ;;  %p56_p4 = scmp.lt.s32.totalorder %s15_s7, %s15_s7 }
   0x9   :  { %p52_p3 = scmp.ne.s32.totalorder %s15_s7, %s51_s15  ;;  %p57_p5 = scmp.lt.s32.totalorder %s51_s15, %s51_s15 }
   0xb   :  { %p58_p6 = por %p57_p5, %p56_p4 }
   0xd   :  { %p59_p7 = pnand %p58_p6, %p52_p3 }
   0xf   :  { %62 = shalt.err (!%p59_p7)
}
  0x10   :  { %17 = dma.hbm_to_vmem [thread:$0]  %s125_s0, 128, %s15_s7, [#allocation3]  }
  0x11   :  { %85 = dma.done.wait [#allocation3], 128  }
  0x12   :  { %86 = vsyncadd [#allocation3], 4294967168  ;;  %s90_s18 = smov [#allocation5]   ;;  %vm22_vm0 = vcmask 105472   ;;  %v21_v0 = vld [vmem:[#allocation2] sm:$0xff] }
  0x13   :  { %s30_s19 = sshll.u32 %s90_s18, 4  ;;  %23 = vst.msk [vmem:[#allocation5] sm:$0xff] %vm22_vm0, %v21_v0  ;;  %s31_s19 = int_to_ptr.vmem [resolvable:$true] %s30_s19 }
  0x14   :  { %s63_s20 = scalar_lea.vmem %s31_s19, 128  ;;  %p68_p9 = scmp.lt.s32.totalorder %s31_s19, %s31_s19 }
  0x15   :  { %p64_p8 = scmp.ne.s32.totalorder %s31_s19, %s63_s20  ;;  %p69_p10 = scmp.lt.s32.totalorder %s63_s20, %s63_s20 }
  0x17   :  { %p70_p11 = por %p69_p10, %p68_p9 }
  0x19   :  { %p71_p12 = pnand %p70_p11, %p64_p8 }
  0x1b   :  { %74 = shalt.err (!%p71_p12)
}
  0x1c   :  { %s75_s23 = scalar_lea.hbm %s126_s1, 128 }
  0x1d   :  { %p76_p13 = scmp.ne.s32.totalorder %s126_s1, %s75_s23  ;;  %p79_p0 = scmp.lt.u32.totalorder %s75_s23, %s126_s1 }
  0x1f   :  { %p81_p1 = pnand %p79_p0, %p76_p13 }
  0x21   :  { %84 = shalt.err (!%p81_p1)
}
  0x22   :  { %33 = dma.vmem_to_hbm [thread:$0]  %s31_s19, 128, %s126_s1, [#allocation4]  }
  0x23   :  { %87 = dma.done.wait [#allocation4], 128  }
  0x24   :  { %88 = vsyncadd [#allocation4], 4294967168 }
  0x25   :  { %37 = vsyncpa [#allocation3], 1 }
  0x26   :  { %38 = vsyncpa [#allocation4], 1 }

</bundles_post_ra>
